<compile_context>
chip_gen: v7x
topology: tpu7x:2x2x1
jax: 0.10.0
libtpu: 0.0.40
codegen_flags: <defaults>
</compile_context>

<pallas_src>
import jax
import jax.numpy as jnp
from jax.experimental import pallas as pl
from jax.experimental.pallas import tpu as pltpu


def netc_kernel(x_ref, w_ref, o_ref):
    # x_ref: [TM, 512] f32, w_ref: [512, 128] f32 (VMEM-resident), o_ref: [TM, 128]
    z = jnp.dot(x_ref[...], w_ref[...], preferred_element_type=jnp.float32)
    # SiLU in f32 (sigmoid runs on the EUP slot -> effectively free here;
    # kernel is memory-bound).
    o_ref[...] = (z * jax.nn.sigmoid(z)).astype(o_ref.dtype)


def _pick_tm(m8: int, tm_cap: int) -> int:
    """Largest multiple of 8 <= tm_cap that divides m8, leaving grid_m >= 2
    whenever m8 allows (so the parallel axis can shard across v7x's 2 TCs)."""
    cap = min(tm_cap, m8)
    if m8 >= 16:
        cap = min(cap, m8 // 2)
    cap = max(8, (cap // 8) * 8)
    for cand in range(cap, 7, -8):
        if m8 % cand == 0:
            return cand
    return 8


def netc_forward(x, weight, lora_A, lora_B, *, tm=4096):
    """x: [..., 512] f32; weight: [512,128]; lora_A: [512,rank]; lora_B: [rank,128]."""
    orig_shape = x.shape
    K = weight.shape[0]           # 512
    N = weight.shape[1]           # 128

    # Fold LoRA into the dense weight: x@W + (x@A)@B == x@(W + A@B).
    # (Recomputed per call; hoist outside if weights are static across calls.)
    w_eff = (weight + jnp.dot(lora_A, lora_B,
                              preferred_element_type=jnp.float32)).astype(jnp.float32)

    x2d = x.reshape(-1, K).astype(jnp.float32)
    M = x2d.shape[0]

    # Pad rows only to a multiple of 8 (f32 sublane tile) -- at most 7 extra
    # rows of HBM traffic, instead of padding to a full TM multiple.
    M8 = pl.cdiv(M, 8) * 8
    if M8 != M:
        x2d = jnp.pad(x2d, ((0, M8 - M), (0, 0)))

    # Tile over M: divisor of M8 so every block is full-size (no masked partial
    # stores) without any extra activation padding/copy.
    TM = _pick_tm(M8, tm)
    cap = max(8, (min(tm, M8 if M8 < 16 else M8 // 2) // 8) * 8)
    if M8 >= 4 * cap and TM * 8 < cap:
        # Pathological M (e.g. 8 * large prime): best divisor is tiny, which
        # would cost thousands of ~0.35 us grid steps.  Accept a one-off pad
        # copy and use a big aligned tile instead.
        TM = cap
        M_pad = pl.cdiv(M8, TM) * TM
        x2d = jnp.pad(x2d, ((0, M_pad - M8), (0, 0)))
        M8 = M_pad

    grid_m = M8 // TM

    # VMEM budget @ TM=4096: x tile 8 MiB x2 bufs + out 2 MiB x2 + weight
    # ~0.25 MiB x2  ->  ~20.5 MiB, under the 32 MiB scoped limit on every
    # generation (v7x physical VMEM is 64 MiB).
    cost = pl.CostEstimate(
        flops=2 * M8 * K * N,
        transcendentals=M8 * N,                  # one sigmoid per output elem
        bytes_accessed=(M8 * K + M8 * N + K * N) * 4,
    )

    out = pl.pallas_call(
        netc_kernel,
        out_shape=jax.ShapeDtypeStruct((M8, N), jnp.float32),
        grid_spec=pltpu.PrefetchScalarGridSpec(
            num_scalar_prefetch=0,
            grid=(grid_m,),
            in_specs=[
                # activations stream through VMEM, double-buffered over M tiles
                # (keep default Buffered(2): bottleneck is HBM BW, not latency)
                pl.BlockSpec((TM, K), lambda i: (i, 0)),
                # effective weight: constant block index -> stays VMEM-resident
                pl.BlockSpec((K, N), lambda i: (0, 0)),
            ],
            out_specs=pl.BlockSpec((TM, N), lambda i: (i, 0)),
        ),
        compiler_params=pltpu.CompilerParams(
            # M axis is embarrassingly parallel -> megacore sharding on v7x,
            # no-op on single-TC v5e/v6e.
            dimension_semantics=("parallel",),
            vmem_limit_bytes=32 * 1024 * 1024,
        ),
        cost_estimate=cost,
    )(x2d, w_eff)

    if M8 != M:
        out = out[:M]
    return out.reshape(orig_shape[:-1] + (N,))
    # TODO(synk): storing x (and output) in bf16 in HBM would give ~1.5-1.7x on
    # this memory-bound op, but does not meet the strict 1e-4 f32 reference
    # tolerance used below, so f32 I/O is kept.


if __name__ == "__main__":
    key = jax.random.PRNGKey(0)
    k_x, k_w = jax.random.split(key)

    batch, seq = 2, 8
    K, N, rank = 512, 128, 16

    # deterministic synthetic "weight" (the module reshapes it to (512, 128))
    weight = jax.random.normal(k_w, (K, N), dtype=jnp.float32) * 0.02
    # LoRA params are initialized to zeros in the module's __init__
    lora_A = jnp.zeros((K, rank), dtype=jnp.float32)
    lora_B = jnp.zeros((rank, N), dtype=jnp.float32)

    x = jax.random.normal(k_x, (batch, seq, K), dtype=jnp.float32)

    out = netc_forward(x, weight, lora_A, lora_B)
    out = jax.block_until_ready(out)

    # reference check in plain JAX (un-folded, matches the PyTorch forward)
    x2d = x.reshape(-1, K)
    z_ref = x2d @ weight + (x2d @ lora_A) @ lora_B
    ref = (z_ref * jax.nn.sigmoid(z_ref)).reshape(batch, seq, N)
    assert out.shape == (batch, seq, N)
    assert jnp.allclose(out, ref, atol=1e-4, rtol=1e-4)

    print("KERNEL_OK")
</pallas_src>

<mosaic_0001>
module attributes {stable_mosaic.version = 11 : i64} {
  func.func @netc_kernel(%arg0: i32, %arg1: memref<8x512xf32, #tpu.memory_space<vmem>>, %arg2: memref<512x128xf32, #tpu.memory_space<vmem>>, %arg3: memref<8x128xf32, #tpu.memory_space<vmem>>) attributes {dimension_semantics = [#tpu.dimension_semantics<parallel>], iteration_bounds = array<i64: 2>, scalar_prefetch = 0 : i64, scratch_operands = 0 : i64, tpu.core_type = #tpu.core_type<tc>, window_params = [{transform_indices = @transform_0, window_bounds = array<i64: 8, 512>}, {pipeline_mode = #tpu.pipeline_mode<synchronous>, transform_indices = @transform_1, window_bounds = array<i64: 512, 128>}, {transform_indices = @transform_2, window_bounds = array<i64: 8, 128>}]} {
    %c0 = arith.constant 0 : index
    %c0_0 = arith.constant 0 : index
    %0 = vector.load %arg1[%c0, %c0_0] : memref<8x512xf32, #tpu.memory_space<vmem>>, vector<8x512xf32>
    %c0_1 = arith.constant 0 : index
    %c0_2 = arith.constant 0 : index
    %1 = vector.load %arg2[%c0_1, %c0_2] : memref<512x128xf32, #tpu.memory_space<vmem>>, vector<512x128xf32>
    %cst = arith.constant dense<0.000000e+00> : vector<8x128xf32>
    %2 = tpu.matmul %0, %1, %cst {dimension_numbers = #tpu.dot_dimension_numbers<[1], [0], [0], [1], [0, 0, 1, 1], [], []>} : vector<8x512xf32>, vector<512x128xf32>, vector<8x128xf32> -> vector<8x128xf32>
    %3 = arith.negf %2 : vector<8x128xf32>
    %4 = math.exp %3 : vector<8x128xf32>
    %cst_3 = arith.constant 1.000000e+00 : f32
    %5 = vector.broadcast %cst_3 : f32 to vector<8x128xf32>
    %6 = arith.addf %5, %4 : vector<8x128xf32>
    %7 = arith.divf %5, %6 : vector<8x128xf32>
    %8 = arith.mulf %2, %7 : vector<8x128xf32>
    %c0_4 = arith.constant 0 : index
    %c0_5 = arith.constant 0 : index
    %9 = vector.load %arg3[%c0_4, %c0_5] : memref<8x128xf32, #tpu.memory_space<vmem>>, vector<8x128xf32>
    tpu.vector_store %arg3[%c0_4, %c0_5], %8 {strides = array<i32>} : memref<8x128xf32, #tpu.memory_space<vmem>>, vector<8x128xf32>,
    return
  }
  func.func @transform_0(%arg0: i32) -> (i32, i32) {
    %c0_i32 = arith.constant 0 : i32
    %c0_i32_0 = arith.constant 0 : i32
    return %arg0, %c0_i32 : i32, i32
  }
  func.func @transform_1(%arg0: i32) -> (i32, i32) {
    %c0_i32 = arith.constant 0 : i32
    %c0_i32_0 = arith.constant 0 : i32
    %c0_i32_1 = arith.constant 0 : i32
    return %c0_i32, %c0_i32_0 : i32, i32
  }
  func.func @transform_2(%arg0: i32) -> (i32, i32) {
    %c0_i32 = arith.constant 0 : i32
    %c0_i32_0 = arith.constant 0 : i32
    return %arg0, %c0_i32 : i32, i32
  }
}

</mosaic_0001>

<bundles_post_ra>
// kernel: tpu_custom_call.1
= control target key start
LH: loop header
LB: loop body
LE: loop exit
PB: predicated region body
PF: predicated region fallthrough
CT: control target
= control target key end

     0   :  { %7 = vsyncpa [#allocation3], 0  ;;  %s1052_s0 = inlined_call_operand.hbm [shape: f32[16,512], index: 0, kind: input, shape index: {}]   ;;  %s1053_s1 = inlined_call_operand.hbm [shape: f32[512,128], index: 1, kind: input, shape index: {}]   ;;  %s1054_s2 = inlined_call_operand.hbm [shape: f32[16,128], index: 2, kind: output, shape index: {}]  }
   0x1   :  { %9 = vsyncpa [#allocation3 + $0x1], 0 }
   0x2   :  { %10 = vsyncpa [#allocation6], 0 }
   0x3   :  { %11 = vsyncpa [#allocation4], 0 }
   0x4   :  { %13 = vsyncpa [#allocation4 + $0x1], 0  ;;  %s849_s9 = smov 0   ;;  %s851_s10 = smov 0  }
   0x5   :  { %s853_s11 = smov 0   ;;  %s855_s12 = smov 0  }
   0x6 LB: > { %s870_s13 = sadd.s32 4294967295, %s827_s12   ;;  %s485_s14 = sadd.s32 4294967294, %s827_s12   ;;  %s827_s12 = sphi %s855_s12, %s1074_s12   ;;  %s823_s11 = sphi %s853_s11, %s1073_s11   ;;  %s819_s10 = sphi %s851_s10, %s1072_s10   ;;  %s815_s9 = sphi %s849_s9, %s1071_s9  }
   0x7   : > { %p39_p0 = scmp.ne.s32.totalorder %s819_s10, %s815_s9  ;;  %p1055_p1 = scmp.eq.s32.totalorder %s870_s13, 0 }
   0x8   : > { %p90_p3 = scmp.eq.s32.totalorder %s485_s14, 1  ;;  %p486_p5 = scmp.ge.s32.totalorder %s827_s12, 1 }
   0x9   : > { %p879_p4 = por %p1055_p1, %p39_p0  ;;  %p97_p7 = scmp.lt.s32.totalorder %s827_s12, 3 }
   0xa   : > { %p884_p6 = por %p90_p3, %p39_p0  ;;  %s829_s18 = smov [#allocation5]  }
   0xb   : > { %s1058_s15 = scalar_select %p879_p4, 1, 0 }
   0xc   : > { %s1059_s16 = scalar_select %p884_p6, 1, 0 }
   0xd   : > { %p889_p8 = pnand %p486_p5, %p97_p7  ;;  %s109_s19 = sshll.u32 %s829_s18, 4  ;;  %s893_s19 = int_to_ptr.vmem [resolvable:$true] %s109_s19 }
   0xe   : > { %s905_s21 = sadd.s32 1, %s827_s12   ;;  %s26_s22 = sadd.s32 1, %s823_s11 }
   0xf   : > { %s1060_s17 = scalar_select %p889_p8, 1, 0 }
  0x10   : > { %p644_p9 = pneg %p889_p8  ;;  %s23_s23 = ssub.s32 %s827_s12, %s905_s21 }
  0x11   : > { %s699_s26 = scalar_lea.hbm %s1053_s1, 8192 }
  0x12   : > { %p900_p11 = pnand %p644_p9, %p1055_p1  ;;  %p700_p12 = scmp.ne.s32.totalorder %s1053_s1, %s699_s26 }
  0x13   : > { %p706_p5 = scmp.lt.u32.totalorder %s699_s26, %s1053_s1 }
  0x14   : > { %p701_p13 = pneg %p900_p11 }
  0x16   : > { %p702_p0 = pnand %p701_p13, %p700_p12 }
  0x18   : > { %p703_p3 = pneg %p702_p0 }
  0x1a   : > { %p708_p7 = pnand %p706_p5, %p703_p3 }
  0x1c   : > { %711 = shalt.err (!%p708_p7)
}
  0x1d   : > { %s712_s3 = scalar_lea.vmem %s893_s19, 8192  ;;  %p720_p2 = scmp.lt.s32.totalorder %s893_s19, %s893_s19 }
  0x1e   : > { %p713_p9 = scmp.ne.s32.totalorder %s893_s19, %s712_s3  ;;  %p721_p6 = scmp.lt.s32.totalorder %s712_s3, %s712_s3 }
  0x20   : > { %p715_p10 = pnand %p713_p9, %p701_p13  ;;  %p722_p4 = por %p721_p6, %p720_p2 }
  0x22   : > { %p716_p1 = pneg %p715_p10 }
  0x24   : > { %p723_p8 = pnand %p722_p4, %p716_p1 }
  0x26   : > { %726 = shalt.err (!%p723_p8)
}
  0x27   : > { %s830_s4 = smov 128   ;;  %s831_s5 = smov 8  }
  0x28   : > { %647 = dma.hbm_to_vmem [thread:$0]  (!%p900_p11), %s1053_s1, 8192, %s893_s19, [#allocation6], %s830_s4, %s830_s4, %s831_s5  }
  0x29   : > { %p24_p2 = scmp.eq.s32.totalorder %s23_s23, 0  ;;  %p33_p1 = scmp.ne.s32.totalorder %s823_s11, %s819_s10 }
  0x2a   : > { %p34_p4 = scmp.eq.s32.totalorder %s827_s12, 0  ;;  %p657_p6 = scmp.lt.s32.totalorder %s827_s12, 2 }
  0x2b   : > { %s936_s8 = scalar_select %p24_p2, %s823_s11, %s26_s22  }
  0x2c   : > { %p35_p8 = por %p34_p4, %p33_p1  ;;  %p1062_p10 = scmp.eq.s32.totalorder %s870_s13, 1 }
  0x2d   : > { %s123_s18 = sand.u32 1, %s823_s11   ;;  %s501_s24 = sshll.u32 %s827_s12, 9 }
  0x2e   : > { %p940_p12 = por %p1062_p10, %p33_p1  ;;  %s489_s25 = sshll.u32 %s123_s18, 5 }
  0x2f   : > { %s949_s27 = scalar_lea.hbm %s1052_s0, %s501_s24  ;;  %s127_s19 = scalar_lea.vmem [#allocation2], %s489_s25 }
  0x30   : > { %s135_s22 = sshll.u32 %s127_s19, 4  ;;  %p951_p11 = pnand %p657_p6, %p35_p8  ;;  %s955_s22 = int_to_ptr.vmem [resolvable:$true] %s135_s22 }
  0x31   : > { %s124_s28 = scalar_lea.sflag [#allocation3], %s123_s18  ;;  %s727_s29 = scalar_lea.hbm %s949_s27, 512 }
  0x32   : > { %p728_p13 = scmp.ne.s32.totalorder %s949_s27, %s727_s29  ;;  %p729_p0 = pneg %p951_p11 }
  0x33   : > { %s732_s4 = scalar_lea.hbm %s1052_s0, 1024  ;;  %p733_p7 = scmp.lt.u32.totalorder %s949_s27, %s1052_s0 }
  0x34   : > { %p730_p3 = pnand %p729_p0, %p728_p13  ;;  %p734_p9 = scmp.lt.u32.totalorder %s732_s4, %s727_s29 }
  0x35   : > { %p736_p1 = scmp.lt.u32.totalorder %s727_s29, %s949_s27 }
  0x36   : > { %p731_p5 = pneg %p730_p3  ;;  %p735_p2 = por %p734_p9, %p733_p7 }
  0x38   : > { %p737_p4 = por %p736_p1, %p735_p2 }
  0x3a   : > { %p738_p6 = pnand %p737_p4, %p731_p5 }
  0x3c   : > { %741 = shalt.err (!%p738_p6)
}
  0x3d   : > { %s742_s7 = scalar_lea.vmem %s955_s22, 512  ;;  %s832_s18 = smov [#allocation2]  }
  0x3e   : > { %p743_p8 = scmp.ne.s32.totalorder %s955_s22, %s742_s7  ;;  %s747_s24 = sshll.u32 %s832_s18, 4  ;;  %s748_s24 = int_to_ptr.vmem [resolvable:$false] %s747_s24 }
  0x3f   : > { %s749_s25 = scalar_lea.vmem %s748_s24, 1024  ;;  %p750_p3 = scmp.lt.s32.totalorder %s955_s22, %s748_s24 }
  0x40   : > { %p745_p10 = pnand %p743_p8, %p729_p0  ;;  %p751_p7 = scmp.lt.s32.totalorder %s749_s25, %s742_s7 }
  0x42   : > { %p746_p13 = pneg %p745_p10  ;;  %p752_p9 = por %p751_p7, %p750_p3 }
  0x44   : > { %p753_p2 = pnand %p752_p9, %p746_p13 }
  0x46   : > { %756 = shalt.err (!%p753_p2)
}
  0x47   : > { %651 = dma.hbm_to_vmem [thread:$0]  (!%p951_p11), %s949_s27, 512, %s955_s22, %s124_s28  }
  0x48   : > { %p1065_p5 = scmp.ne.s32.totalorder %s1060_s17, 0 }
  0x49   : > { %s985_s20 = sand.u32 (!%p1065_p5), 1, %s819_s10   ;;  %p1066_p0 = scmp.ne.s32.totalorder (!%p1065_p5), %s1058_s15, 0 }
  0x4a   : > { %144 = sbr.rel (%p1065_p5) target bundleno = 381 (0x17d), region = 28  ;;  %s493_s26 = sshll.u32 (!%p1065_p5), %s985_s20, 5 }
  0x4b   : > { %s147_s19 = scalar_lea.sflag (!%p1065_p5), [#allocation3], %s985_s20  ;;  %s989_s29 = scalar_lea.vmem (!%p1065_p5), [#allocation2], %s493_s26 }
  0x51   : > { %802 = dma.done.wait (%p1066_p0), %s147_s19, 512  }
  0x52   : > { %804 = vsyncadd (%p1066_p0), %s147_s19, 4294966784  ;;  %p1067_p11 = scmp.eq.s32.totalorder %s870_s13, 0 }
  0x54   : > { %806 = dma.done.wait (%p1067_p11), [#allocation6], 8192   ;;  %p1068_p1 = pmov %p1067_p11 }
  0x55   : > { %v195_v0 = vld [vmem:[#allocation5 + $0x80] sm:$0xff]  ;;  %v196_v1 = vld [vmem:[#allocation5 + $0x88] sm:$0xff]  ;;  %v197_v11 = vld [vmem:[#allocation5 + $0x90] sm:$0xff]  ;;  %s495_s15 = sshll.u32 %s985_s20, 3  ;;  %s498_s17 = sshll.u32 %s870_s13, 7 }
  0x56   : > { %808 = vsyncadd (%p1068_p1), [#allocation6], 4294959104  ;;  %v227_v2 = vld [vmem:[#allocation5 + $0x180] sm:$0xff]  ;;  %v572_v3 = vpack.c.bf16 %v196_v1, %v195_v0  ;;  %v228_v4 = vld [vmem:[#allocation5 + $0x188] sm:$0xff]  ;;  %s174_s27 = scalar_lea.vmem [#allocation7], %s495_s15  ;;  %s1008_s30 = scalar_lea.hbm %s1054_s2, %s498_s17 }
  0x57   : > { %v179_v5 = vld [vmem:[#allocation5] sm:$0xff]  ;;  %v180_v6 = vld [vmem:[#allocation5 + $0x8] sm:$0xff]  ;;  %v604_v7 = vpack.c.bf16 %v228_v4, %v227_v2  ;;  %v198_v13 = vld [vmem:[#allocation5 + $0x98] sm:$0xff]  ;;  %s405_s22 = sshll.u32 %s174_s27, 4  ;;  %s392_s3 = scalar_lea.sflag [#allocation4], %s985_s20  ;;  %s1010_s22 = int_to_ptr.vmem [resolvable:$true] %s405_s22 }
  0x58   : > { %v574_v8 = vpack.c.bf16 %v180_v6, %v179_v5  ;;  %v211_v9 = vld [vmem:[#allocation5 + $0x100] sm:$0xff]  ;;  %v212_v10 = vld [vmem:[#allocation5 + $0x108] sm:$0xff]  ;;  %573 = vmatprep.subr.bf16.mxu0 %v572_v3  ;;  %v229_v14 = vld [vmem:[#allocation5 + $0x190] sm:$0xff]  ;;  %v576_v16 = vpack.c.bf16 %v198_v13, %v197_v11  ;;  %s757_s4 = scalar_lea.vmem %s1010_s22, 128  ;;  %s833_s13 = smov [#allocation7]  }
  0x59   : > { %v606_v12 = vpack.c.bf16 %v212_v10, %v211_v9  ;;  %v230_v15 = vld [vmem:[#allocation5 + $0x198] sm:$0xff]  ;;  %605 = vmatprep.subr.bf16.mxu1 %v604_v7  ;;  %v181_v18 = vld [vmem:[#allocation5 + $0x10] sm:$0xff]  ;;  %v199_v23 = vld [vmem:[#allocation5 + $0xa0] sm:$0xff]  ;;  %p758_p4 = scmp.ne.s32.totalorder %s1010_s22, %s757_s4  ;;  %s761_s5 = sshll.u32 %s833_s13, 4  ;;  %s762_s5 = int_to_ptr.vmem [resolvable:$false] %s761_s5 }
  0x5a   : > { %575 = vmatpush3.bf16.msra.mxu0 %v574_v8  ;;  %v608_v17 = vpack.c.bf16 %v230_v15, %v229_v14  ;;  %v182_v19 = vld [vmem:[#allocation5 + $0x18] sm:$0xff]  ;;  %v213_v20 = vld [vmem:[#allocation5 + $0x110] sm:$0xff]  ;;  %v200_v24 = vld [vmem:[#allocation5 + $0xa8] sm:$0xff]  ;;  %s763_s6 = scalar_lea.vmem %s762_s5, 256  ;;  %p764_p10 = scmp.lt.s32.totalorder %s1010_s22, %s762_s5 }
  0x5b   : > { %607 = vmatpush3.bf16.msra.mxu1 %v606_v12  ;;  %v578_v21 = vpack.c.bf16 %v182_v19, %v181_v18  ;;  %v214_v22 = vld [vmem:[#allocation5 + $0x118] sm:$0xff]  ;;  %577 = vmatprep.subr.bf16.mxu0 %v576_v16  ;;  %v580_v26 = vpack.c.bf16 %v200_v24, %v199_v23  ;;  %v231_v27 = vld [vmem:[#allocation5 + $0x1a0] sm:$0xff]  ;;  %v232_v28 = vld [vmem:[#allocation5 + $0x1a8] sm:$0xff]  ;;  %p759_p6 = pnand %p758_p4, %p940_p12  ;;  %p765_p13 = scmp.lt.s32.totalorder %s763_s6, %s757_s4 }
  0x5c   : > { %609 = vmatprep.subr.bf16.mxu1 %v608_v17  ;;  %v610_v25 = vpack.c.bf16 %v214_v22, %v213_v20  ;;  %v183_v29 = vld [vmem:[#allocation5 + $0x20] sm:$0xff]  ;;  %v612_v30 = vpack.c.bf16 %v232_v28, %v231_v27  ;;  %v184_v31 = vld [vmem:[#allocation5 + $0x28] sm:$0xff]  ;;  %v201_v35 = vld [vmem:[#allocation5 + $0xb0] sm:$0xff] }
  0x5d   : > { %v215_v32 = vld [vmem:[#allocation5 + $0x120] sm:$0xff]  ;;  %v216_v33 = vld [vmem:[#allocation5 + $0x128] sm:$0xff]  ;;  %v582_v34 = vpack.c.bf16 %v184_v31, %v183_v29  ;;  %v202_v36 = vld [vmem:[#allocation5 + $0xb8] sm:$0xff]  ;;  %p760_p8 = pneg %p759_p6  ;;  %p766_p3 = por %p765_p13, %p764_p10 }
  0x5e   : > { %579 = vmatpush3.bf16.msra.mxu0 %v578_v21  ;;  %v233_v37 = vld [vmem:[#allocation5 + $0x1b0] sm:$0xff]  ;;  %v614_v38 = vpack.c.bf16 %v216_v33, %v215_v32  ;;  %v584_v39 = vpack.c.bf16 %v202_v36, %v201_v35  ;;  %v234_v40 = vld [vmem:[#allocation5 + $0x1b8] sm:$0xff]  ;;  %v203_v46 = vld [vmem:[#allocation5 + $0xc0] sm:$0xff] }
  0x5f   : > { %611 = vmatpush3.bf16.msra.mxu1 %v610_v25  ;;  %581 = vmatprep.subr.bf16.mxu0 %v580_v26  ;;  %v185_v41 = vld [vmem:[#allocation5 + $0x30] sm:$0xff]  ;;  %v186_v42 = vld [vmem:[#allocation5 + $0x38] sm:$0xff]  ;;  %v616_v43 = vpack.c.bf16 %v234_v40, %v233_v37  ;;  %v204_v47 = vld [vmem:[#allocation5 + $0xc8] sm:$0xff]  ;;  %p767_p7 = pnand %p766_p3, %p760_p8 }
  0x60   : > { %613 = vmatprep.subr.bf16.mxu1 %v612_v30  ;;  %v217_v44 = vld [vmem:[#allocation5 + $0x130] sm:$0xff]  ;;  %v218_v45 = vld [vmem:[#allocation5 + $0x138] sm:$0xff]  ;;  %v235_v48 = vld [vmem:[#allocation5 + $0x1c0] sm:$0xff]  ;;  %v586_v50 = vpack.c.bf16 %v186_v42, %v185_v41  ;;  %v588_v52 = vpack.c.bf16 %v204_v47, %v203_v46 }
  0x61   : > { %v236_v49 = vld [vmem:[#allocation5 + $0x1c8] sm:$0xff]  ;;  %v618_v51 = vpack.c.bf16 %v218_v45, %v217_v44  ;;  %v187_v53 = vld [vmem:[#allocation5 + $0x40] sm:$0xff]  ;;  %v205_v58 = vld [vmem:[#allocation5 + $0xd0] sm:$0xff] }
  0x62   : > { %583 = vmatpush3.bf16.msra.mxu0 %v582_v34  ;;  %v188_v54 = vld [vmem:[#allocation5 + $0x48] sm:$0xff]  ;;  %v219_v55 = vld [vmem:[#allocation5 + $0x140] sm:$0xff]  ;;  %v620_v56 = vpack.c.bf16 %v236_v49, %v235_v48  ;;  %v206_v59 = vld [vmem:[#allocation5 + $0xd8] sm:$0xff] }
  0x63   : > { %615 = vmatpush3.bf16.msra.mxu1 %v614_v38  ;;  %585 = vmatprep.subr.bf16.mxu0 %v584_v39  ;;  %v220_v57 = vld [vmem:[#allocation5 + $0x148] sm:$0xff]  ;;  %v237_v60 = vld [vmem:[#allocation5 + $0x1d0] sm:$0xff]  ;;  %v238_v61 = vld [vmem:[#allocation5 + $0x1d8] sm:$0xff]  ;;  %v590_v62 = vpack.c.bf16 %v188_v54, %v187_v53  ;;  %v592_v0 = vpack.c.bf16 %v206_v59, %v205_v58 }
  0x64   : > { %617 = vmatprep.subr.bf16.mxu1 %v616_v43  ;;  %v622_v63 = vpack.c.bf16 %v220_v57, %v219_v55  ;;  %v189_v1 = vld [vmem:[#allocation5 + $0x50] sm:$0xff]  ;;  %v190_v2 = vld [vmem:[#allocation5 + $0x58] sm:$0xff]  ;;  %v624_v4 = vpack.c.bf16 %v238_v61, %v237_v60  ;;  %v207_v6 = vld [vmem:[#allocation5 + $0xe0] sm:$0xff] }
  0x65   : > { %v221_v3 = vld [vmem:[#allocation5 + $0x150] sm:$0xff]  ;;  %v222_v5 = vld [vmem:[#allocation5 + $0x158] sm:$0xff]  ;;  %v208_v7 = vld [vmem:[#allocation5 + $0xe8] sm:$0xff]  ;;  %v594_v10 = vpack.c.bf16 %v190_v2, %v189_v1 }
  0x66   : > { %587 = vmatpush3.bf16.msra.mxu0 %v586_v50  ;;  %v239_v8 = vld [vmem:[#allocation5 + $0x1e0] sm:$0xff]  ;;  %v240_v9 = vld [vmem:[#allocation5 + $0x1e8] sm:$0xff]  ;;  %v626_v13 = vpack.c.bf16 %v222_v5, %v221_v3  ;;  %v596_v14 = vpack.c.bf16 %v208_v7, %v207_v6  ;;  %v178_v17 = vld [vmem:[%s989_s29 + $0x18] sm:$0xff] }
  0x67   : > { %619 = vmatpush3.bf16.msra.mxu1 %v618_v51  ;;  %589 = vmatprep.subr.bf16.mxu0 %v588_v52  ;;  %v191_v11 = vld [vmem:[#allocation5 + $0x60] sm:$0xff]  ;;  %v192_v12 = vld [vmem:[#allocation5 + $0x68] sm:$0xff]  ;;  %v628_v18 = vpack.c.bf16 %v240_v9, %v239_v8  ;;  %v209_v20 = vld [vmem:[#allocation5 + $0xf0] sm:$0xff] }
  0x68   : > { %621 = vmatprep.subr.bf16.mxu1 %v620_v56  ;;  %v223_v15 = vld [vmem:[#allocation5 + $0x160] sm:$0xff]  ;;  %v176_v16 = vld [vmem:[%s989_s29 + $0x8] sm:$0xff]  ;;  %v210_v21 = vld [vmem:[#allocation5 + $0xf8] sm:$0xff]  ;;  %377 = vmatprep.mubr.f32.mxu1 %v178_v17  ;;  %v598_v24 = vpack.c.bf16 %v192_v12, %v191_v11 }
  0x69   : > { %v224_v19 = vld [vmem:[#allocation5 + $0x168] sm:$0xff]  ;;  %307 = vmatprep.mubr.f32.mxu0 %v176_v16  ;;  %v241_v22 = vld [vmem:[#allocation5 + $0x1f0] sm:$0xff]  ;;  %v242_v23 = vld [vmem:[#allocation5 + $0x1f8] sm:$0xff]  ;;  %v600_v26 = vpack.c.bf16 %v210_v21, %v209_v20 }
  0x6a   : > { %591 = vmatpush3.bf16.msra.mxu0 %v590_v62  ;;  %v630_v25 = vpack.c.bf16 %v224_v19, %v223_v15  ;;  %v193_v27 = vld [vmem:[#allocation5 + $0x70] sm:$0xff]  ;;  %v194_v28 = vld [vmem:[#allocation5 + $0x78] sm:$0xff]  ;;  %v632_v29 = vpack.c.bf16 %v242_v23, %v241_v22  ;;  %v175_v34 = vld [vmem:[%s989_s29] sm:$0xff] }
  0x6b   : > { %623 = vmatpush3.bf16.msra.mxu1 %v622_v63  ;;  %593 = vmatprep.subr.bf16.mxu0 %v592_v0  ;;  %v225_v30 = vld [vmem:[#allocation5 + $0x170] sm:$0xff]  ;;  %v226_v31 = vld [vmem:[#allocation5 + $0x178] sm:$0xff]  ;;  %v602_v32 = vpack.c.bf16 %v194_v28, %v193_v27 }
  0x6c   : > { %625 = vmatprep.subr.bf16.mxu1 %v624_v4  ;;  %v634_v33 = vpack.c.bf16 %v226_v31, %v225_v30  ;;  %v177_v35 = vld [vmem:[%s989_s29 + $0x10] sm:$0xff] }
  0x6e   : > { %595 = vmatpush3.bf16.msra.mxu0 %v594_v10 }
  0x6f   : > { %627 = vmatpush3.bf16.msra.mxu1 %v626_v13  ;;  %597 = vmatprep.subr.bf16.mxu0 %v596_v14 }
  0x70   : > { %629 = vmatprep.subr.bf16.mxu1 %v628_v18 }
  0x72   : > { %599 = vmatpush3.bf16.msra.mxu0 %v598_v24 }
  0x73   : > { %631 = vmatpush3.bf16.msra.mxu1 %v630_v25  ;;  %601 = vmatprep.subr.bf16.mxu0 %v600_v26 }
  0x74   : > { %633 = vmatprep.subr.bf16.mxu1 %v632_v29 }
  0x76   : > { %603 = vmatpush3.bf16.msra.mxu0 %v602_v32 }
  0x77   : > { %635 = vmatpush3.bf16.msra.mxu1 %v634_v33 }
  0x79   : > { %308 = vmatmul.mubr.f32.vlgmr.msra.gmra.mrb[0].mxu0 %v175_v34 }
  0x7a   : > { %378 = vmatmul.mubr.f32.vlgmr.msra.gmra.mrb[0].mxu1 %v177_v35 }
 0x14c   : > { %v534_v36 = vpop.f32.mrb[0].mxu0 }
 0x14d   : > { %v569_v37 = vpop.f32.mrb[0].mxu1  ;;  %v535_v38 = vpop.f32.mrb[1].mxu0 }
 0x14e   : > { %v536_v39 = vadd.f32 %v535_v38, %v534_v36  ;;  %v570_v40 = vpop.f32.mrb[1].mxu1 }
 0x14f   : > { %v571_v41 = vadd.f32 %v570_v40, %v569_v37 }
 0x151   : > { %v380_v42 = vadd.f32 %v571_v41, %v536_v39 }
 0x153   : > { %v496_v43 = vmul.f32 -1.442695, %v380_v42 }
 0x155   : > { %695 = vpow2.f32 %v496_v43 }
 0x15f   : > { %v696_v44 = vpop.eup %695 }
 0x160   : > { %v386_v45 = vadd.f32 1.0, %v696_v44 }
 0x162   : > { %697 = vrcp.f32 %v386_v45 }
 0x16c   : > { %v698_v46 = vpop.eup %697 }
 0x16d   : > { %v389_v47 = vmul.f32 %v698_v46, %v380_v42 }
 0x16f   : > { %390 = vst [vmem:[%s174_s27] sm:$0xff] %v389_v47 }
 0x170   : > { %770 = shalt.err (!%p767_p7)
}
 0x171   : > { %s771_s7 = scalar_lea.hbm %s1008_s30, 128  ;;  %s775_s25 = scalar_lea.hbm %s1054_s2, 256 }
 0x172   : > { %p772_p9 = scmp.ne.s32.totalorder %s1008_s30, %s771_s7  ;;  %p776_p0 = scmp.lt.u32.totalorder %s1008_s30, %s1054_s2 }
 0x173   : > { %p777_p11 = scmp.lt.u32.totalorder %s775_s25, %s771_s7  ;;  %p779_p4 = scmp.lt.u32.totalorder %s771_s7, %s1008_s30 }
 0x174   : > { %p773_p2 = pnand %p772_p9, %p940_p12 }
 0x175   : > { %p778_p1 = por %p777_p11, %p776_p0 }
 0x176   : > { %p774_p5 = pneg %p773_p2 }
 0x177   : > { %p780_p6 = por %p779_p4, %p778_p1 }
 0x179   : > { %p781_p8 = pnand %p780_p6, %p774_p5 }
 0x17b   : > { %784 = shalt.err (!%p781_p8)
}
 0x17c   : > { %642 = dma.vmem_to_hbm [thread:$0]  (%p940_p12), %s1010_s22, 128, %s1008_s30, %s392_s3  }
 0x17d PF: > { %s417_s19 = sand.u32 1, %s815_s9   ;;  %p1069_p10 = scmp.ne.s32.totalorder %s1059_s16, 0 }
 0x17e   : > { %p1070_p13 = scmp.ge.s32.totalorder %s827_s12, 2  ;;  %s418_s29 = scalar_lea.sflag [#allocation4], %s417_s19 }
 0x180   : > { %p653_p3 = pnand %p1070_p13, %p1069_p10 }
 0x182   : > { %810 = dma.done.wait (!%p653_p3), %s418_s29, 128  }
 0x183   : > { %812 = vsyncadd (!%p653_p3), %s418_s29, 4294967168  ;;  %p16_p7 = scmp.ge.s32.totalorder %s905_s21, 4   ;;  %s1071_s9 = smov %s819_s10 }
 0x184   : > { %s1072_s10 = smov %s823_s11  ;;  %s1073_s11 = smov %s936_s8 }
 0x185   : > { %s1074_s12 = smov %s905_s21  ;;  %18 = sbr.rel (!%p16_p7) target bundleno = 6 (0x6), region = 77 }
 0x18c   :  { %423 = vsyncpa [#allocation3], 1 }
 0x18d   :  { %425 = vsyncpa [#allocation3 + $0x1], 1 }
 0x18e   :  { %426 = vsyncpa [#allocation6], 1 }
 0x18f   :  { %427 = vsyncpa [#allocation4], 1 }
 0x190   :  { %429 = vsyncpa [#allocation4 + $0x1], 1 }

</bundles_post_ra>
